<compile_context>
chip_gen: v5e
topology: v5e:2x2
jax: 0.10.0
libtpu: 0.0.40
codegen_flags: <defaults>
</compile_context>

<pallas_src>
import functools

import jax
import jax.numpy as jnp
from jax import lax
from jax.experimental import pallas as pl
from jax.experimental.pallas import tpu as pltpu


BN_EPS = 1e-5


def _round_up(x, m):
    return ((x + m - 1) // m) * m


def _divisor_tiles(total, unit, cap):
    """Divisors of `total` that are multiples of `unit` and <= cap, descending."""
    cands = []
    t = unit
    lim = min(total, cap)
    while t <= lim:
        if total % t == 0:
            cands.append(t)
        t += unit
    return sorted(cands, reverse=True) or [total]


def _fc_bn_relu_kernel(x_ref, w_ref, gamma_ref, beta_ref, o_ref, *scratch,
                       tile_n, n_valid, stage_in_out):
    # Grid: (j: D_out tile [parallel], k: D_in tile [reduction], i: N row tile).
    k = pl.program_id(1)
    i = pl.program_id(2)

    # Pre-BN column slab for this D_out tile: the output block itself when the
    # output dtype is f32, otherwise an f32 VMEM scratch (precision / accumulation).
    slab = o_ref if stage_in_out else scratch[0]

    # Linear partial product for this (row tile, K tile).  Weight is kept in the
    # PyTorch (D_out, D_in) layout; contracting RHS dim 1 is the MXU trans_b form
    # (no per-step XLU transpose), and the weight block is resident across the
    # whole inner i loop, so it is streamed from HBM only once per (j, k).
    partial = lax.dot_general(
        x_ref[...], w_ref[...],
        dimension_numbers=(((1,), (1,)), ((), ())),
        preferred_element_type=jnp.float32,
    )

    row0 = pl.multiple_of(i * tile_n, tile_n)
    rows = pl.ds(row0, tile_n)

    @pl.when(k == 0)
    def _init_rows():
        slab[rows, :] = partial.astype(slab.dtype)

    @pl.when(k > 0)
    def _accum_rows():
        slab[rows, :] = slab[rows, :] + partial.astype(slab.dtype)

    # Epilogue: after the last (k, i) step for this D_out tile the full pre-BN
    # column slab is resident in VMEM; compute batch statistics with the centered
    # (numerically robust) form and apply the fused BN-affine + ReLU in place.
    last = (k == pl.num_programs(1) - 1) & (i == pl.num_programs(2) - 1)

    @pl.when(last)
    def _finalize():
        y = slab[...].astype(jnp.float32)                       # (n_pad, td)
        inv_n = jnp.float32(1.0 / n_valid)
        mean = jnp.sum(y, axis=0, keepdims=True) * inv_n        # zero pad rows are exact zeros
        diff = y - mean
        if slab.shape[0] != n_valid:                            # mask zero-padded rows (static)
            row_ids = lax.broadcasted_iota(jnp.int32, y.shape, 0)
            diff = jnp.where(row_ids < n_valid, diff, 0.0)
        var = jnp.sum(diff * diff, axis=0, keepdims=True) * inv_n   # biased variance
        scale = gamma_ref[...] * lax.rsqrt(var + BN_EPS)        # EUP rsqrt
        shift = beta_ref[...] - mean * scale
        o_ref[...] = jnp.maximum(y * scale + shift, 0.0).astype(o_ref.dtype)


def fully_connected_forward(x, weight, bias, gamma, beta, *, matmul_dtype=None):
    """x: (N, D_in); weight: (D_out, D_in) PyTorch layout; bias/gamma/beta: (D_out,)."""
    del bias  # Exactly cancelled by BatchNorm's mean subtraction (training mode).

    n, d_in = x.shape
    d_out, d_in_w = weight.shape
    assert d_in == d_in_w, "weight must be (D_out, D_in)"

    out_dtype = x.dtype
    stage_in_out = (jnp.dtype(out_dtype) == jnp.dtype(jnp.float32))

    # --- Generation-aware VMEM budget (v5e/v6e 128 MiB, v7x 64 MiB per TC) ---
    try:
        vmem_cap = int(pltpu.get_tpu_info().vmem_capacity_bytes)
    except Exception:
        vmem_cap = 64 * 1024 * 1024  # conservative (v7x-sized) fallback
    budget = int(vmem_cap * 0.70)    # tile-selection budget (leave pipelining headroom)
    vmem_limit = int(vmem_cap * 0.90)

    # --- Pad N to a friendly multiple (zero rows are statistics-safe: bias elided) ---
    if n <= 512:
        tn = _round_up(n, 8)
        n_pad = tn
    else:
        tn = 256
        n_pad = _round_up(n, tn)

    # --- Pad D_out to a multiple of 128 for lane-dense (unmasked) epilogue stores ---
    d_out_pad = _round_up(d_out, 128)

    x_bytes = jnp.dtype(matmul_dtype or x.dtype).itemsize
    w_bytes = jnp.dtype(matmul_dtype or weight.dtype).itemsize
    out_bytes = jnp.dtype(out_dtype).itemsize
    slab_per_col = n_pad * (out_bytes if stage_in_out else out_bytes + 4)

    # D_out tile: largest divisor of d_out_pad (multiple of 128) whose resident
    # column slab fits within half the budget (bigger td => fewer x re-streams).
    td = None
    for cand in _divisor_tiles(d_out_pad, 128, 4096):
        if cand * slab_per_col <= budget // 2:
            td = cand
            break
    if td is None:
        # TODO(synk): for very large N, spill the staged column slab through HBM and
        # apply the BN-affine + ReLU epilogue in a second lightweight kernel.
        raise NotImplementedError(
            "resident pre-BN column slab exceeds the VMEM budget; HBM-spill epilogue "
            "fallback not implemented")

    # K (D_in) tile: keep x/weight DMA blocks small when D_in is large.
    if d_in % 128 == 0 and d_in > 1024:
        tk_cands = _divisor_tiles(d_in, 128, 1024)
    else:
        tk_cands = [d_in]
    rem = budget - td * slab_per_col
    tk = tk_cands[-1]
    for cand in tk_cands:
        if 2 * tn * cand * x_bytes + 2 * td * cand * w_bytes <= rem:
            tk = cand
            break

    n_j = d_out_pad // td
    n_k = d_in // tk
    n_i = n_pad // tn

    # --- Host-side padding / optional MXU dtype staging ---
    x_p = x if n_pad == n else jnp.pad(x, ((0, n_pad - n), (0, 0)))
    w_p = weight if d_out_pad == d_out else jnp.pad(weight, ((0, d_out_pad - d_out), (0, 0)))
    if matmul_dtype is not None:
        x_p = x_p.astype(matmul_dtype)
        w_p = w_p.astype(matmul_dtype)
    g2 = jnp.pad(gamma.astype(jnp.float32), (0, d_out_pad - d_out)).reshape(1, d_out_pad)
    b2 = jnp.pad(beta.astype(jnp.float32), (0, d_out_pad - d_out)).reshape(1, d_out_pad)

    kernel = functools.partial(_fc_bn_relu_kernel, tile_n=tn, n_valid=n,
                               stage_in_out=stage_in_out)

    cost = pl.CostEstimate(
        flops=2 * n * d_in * d_out,
        transcendentals=d_out,
        bytes_accessed=(n_j * n_pad * d_in * x_bytes        # x re-streamed once per D_out tile
                        + d_out_pad * d_in * w_bytes        # weight streamed exactly once
                        + n_pad * d_out_pad * out_bytes     # output writeback
                        + 2 * 4 * d_out_pad),               # gamma/beta
    )

    scratch_shapes = [] if stage_in_out else [pltpu.VMEM((n_pad, td), jnp.float32)]

    out = pl.pallas_call(
        kernel,
        out_shape=jax.ShapeDtypeStruct((n_pad, d_out_pad), out_dtype),
        grid_spec=pltpu.PrefetchScalarGridSpec(
            num_scalar_prefetch=0,
            grid=(n_j, n_k, n_i),
            in_specs=[
                pl.BlockSpec((tn, tk), lambda j, k, i: (i, k)),    # x row/K tile
                pl.BlockSpec((td, tk), lambda j, k, i: (j, k)),    # weight tile (PyTorch layout)
                pl.BlockSpec((1, td), lambda j, k, i: (0, j)),     # gamma
                pl.BlockSpec((1, td), lambda j, k, i: (0, j)),     # beta
            ],
            # Full-column slab per D_out tile; VMEM-resident across the K and N axes
            # and written back to HBM once per D_out tile.
            out_specs=pl.BlockSpec((n_pad, td), lambda j, k, i: (0, j)),
            scratch_shapes=scratch_shapes,
        ),
        compiler_params=pltpu.CompilerParams(
            dimension_semantics=("parallel", "arbitrary", "arbitrary"),
            vmem_limit_bytes=vmem_limit,
        ),
        cost_estimate=cost,
    )(x_p, w_p, g2, b2)

    if n_pad != n or d_out_pad != d_out:
        out = out[:n, :d_out]
    return out


def _reference(x, weight, bias, gamma, beta):
    # Exact PyTorch forward: Linear (with bias) -> BatchNorm1d (batch stats) -> ReLU.
    y = x @ weight.T + bias
    mean = jnp.mean(y, axis=0, keepdims=True)
    var = jnp.mean((y - mean) ** 2, axis=0, keepdims=True)
    y = (y - mean) / jnp.sqrt(var + BN_EPS)
    y = y * gamma + beta
    return jnp.maximum(y, 0.0)


if __name__ == "__main__":
    key = jax.random.PRNGKey(0)
    k_x, k_w, k_b, k_g, k_be = jax.random.split(key, 5)

    N, D_IN, D_OUT = 8, 32, 128

    x = jax.random.normal(k_x, (N, D_IN), dtype=jnp.float32)

    # nn.Linear default init: U(-1/sqrt(D_in), 1/sqrt(D_in)).
    bound = 1.0 / (D_IN ** 0.5)
    weight = jax.random.uniform(k_w, (D_OUT, D_IN), minval=-bound, maxval=bound,
                                dtype=jnp.float32)
    bias = jax.random.uniform(k_b, (D_OUT,), minval=-bound, maxval=bound,
                              dtype=jnp.float32)
    # Non-trivial BN affine parameters to exercise the scale/shift path.
    gamma = 1.0 + 0.1 * jax.random.normal(k_g, (D_OUT,), dtype=jnp.float32)
    beta = 0.1 * jax.random.normal(k_be, (D_OUT,), dtype=jnp.float32)

    out = fully_connected_forward(x, weight, bias, gamma, beta)
    out = jax.block_until_ready(out)

    ref = _reference(x, weight, bias, gamma, beta)
    assert out.shape == (N, D_OUT)
    assert jnp.allclose(out, ref, atol=1e-4, rtol=1e-4), "mismatch vs reference"

    print("KERNEL_OK")
</pallas_src>

<mosaic_0001>
module attributes {stable_mosaic.version = 11 : i64} {
  func.func @_fc_bn_relu_kernel(%arg0: i32, %arg1: i32, %arg2: i32, %arg3: memref<8x32xf32, #tpu.memory_space<vmem>>, %arg4: memref<128x32xf32, #tpu.memory_space<vmem>>, %arg5: memref<1x128xf32, #tpu.memory_space<vmem>>, %arg6: memref<1x128xf32, #tpu.memory_space<vmem>>, %arg7: memref<8x128xf32, #tpu.memory_space<vmem>>) attributes {dimension_semantics = [#tpu.dimension_semantics<parallel>, #tpu.dimension_semantics<arbitrary>, #tpu.dimension_semantics<arbitrary>], iteration_bounds = array<i64: 1, 1, 1>, scalar_prefetch = 0 : i64, scratch_operands = 0 : i64, tpu.core_type = #tpu.core_type<tc>, window_params = [{transform_indices = @transform_0, window_bounds = array<i64: 8, 32>}, {transform_indices = @transform_1, window_bounds = array<i64: 128, 32>}, {transform_indices = @transform_2, window_bounds = array<i64: 1, 128>}, {transform_indices = @transform_3, window_bounds = array<i64: 1, 128>}, {transform_indices = @transform_4, window_bounds = array<i64: 8, 128>}]} {
    %c0 = arith.constant 0 : index
    %c0_0 = arith.constant 0 : index
    %0 = vector.load %arg3[%c0, %c0_0] : memref<8x32xf32, #tpu.memory_space<vmem>>, vector<8x32xf32>
    %c0_1 = arith.constant 0 : index
    %c0_2 = arith.constant 0 : index
    %1 = vector.load %arg4[%c0_1, %c0_2] : memref<128x32xf32, #tpu.memory_space<vmem>>, vector<128x32xf32>
    %cst = arith.constant dense<0.000000e+00> : vector<8x128xf32>
    %2 = tpu.matmul %0, %1, %cst {dimension_numbers = #tpu.dot_dimension_numbers<[1], [1], [0], [0], [0, 0, 1, 0], [], []>} : vector<8x32xf32>, vector<128x32xf32>, vector<8x128xf32> -> vector<8x128xf32>
    %c8_i32 = arith.constant 8 : i32
    %3 = arith.muli %arg2, %c8_i32 : i32
    %4 = tpu.assume_multiple %3, 8 : i32
    %c0_i32 = arith.constant 0 : i32
    %5 = arith.cmpi eq, %arg1, %c0_i32 : i32
    %6 = arith.extui %5 : i1 to i32
    %c0_i32_3 = arith.constant 0 : i32
    %7 = arith.cmpi ne, %6, %c0_i32_3 : i32
    scf.if %7 {
      %16 = arith.index_cast %4 : i32 to index
      %c0_9 = arith.constant 0 : index
      %17 = vector.load %arg7[%16, %c0_9] : memref<8x128xf32, #tpu.memory_space<vmem>>, vector<8x128xf32>
      tpu.vector_store %arg7[%16, %c0_9], %2 {strides = array<i32>} : memref<8x128xf32, #tpu.memory_space<vmem>>, vector<8x128xf32>,
    } else {
    }
    %c0_i32_4 = arith.constant 0 : i32
    %8 = arith.cmpi sgt, %arg1, %c0_i32_4 : i32
    %9 = arith.extui %8 : i1 to i32
    %c0_i32_5 = arith.constant 0 : i32
    %10 = arith.cmpi ne, %9, %c0_i32_5 : i32
    scf.if %10 {
      %16 = arith.index_cast %4 : i32 to index
      %c0_9 = arith.constant 0 : index
      %17 = vector.load %arg7[%16, %c0_9] : memref<8x128xf32, #tpu.memory_space<vmem>>, vector<8x128xf32>
      %18 = arith.addf %17, %2 : vector<8x128xf32>
      %19 = arith.index_cast %4 : i32 to index
      %c0_10 = arith.constant 0 : index
      %20 = vector.load %arg7[%19, %c0_10] : memref<8x128xf32, #tpu.memory_space<vmem>>, vector<8x128xf32>
      tpu.vector_store %arg7[%19, %c0_10], %18 {strides = array<i32>} : memref<8x128xf32, #tpu.memory_space<vmem>>, vector<8x128xf32>,
    } else {
    }
    %c0_i32_6 = arith.constant 0 : i32
    %11 = arith.cmpi eq, %arg1, %c0_i32_6 : i32
    %c0_i32_7 = arith.constant 0 : i32
    %12 = arith.cmpi eq, %arg2, %c0_i32_7 : i32
    %13 = arith.andi %11, %12 : i1
    %14 = arith.extui %13 : i1 to i32
    %c0_i32_8 = arith.constant 0 : i32
    %15 = arith.cmpi ne, %14, %c0_i32_8 : i32
    scf.if %15 {
      %c0_9 = arith.constant 0 : index
      %c0_10 = arith.constant 0 : index
      %16 = vector.load %arg7[%c0_9, %c0_10] : memref<8x128xf32, #tpu.memory_space<vmem>>, vector<8x128xf32>
      %cst_11 = arith.constant dense<0.000000e+00> : vector<128xf32>
      %17 = vector.multi_reduction <add>, %16, %cst_11 [0] : vector<8x128xf32> to vector<128xf32>
      %18 = vector.shape_cast %17 : vector<128xf32> to vector<1x128xf32>
      %cst_12 = arith.constant 1.250000e-01 : f32
      %19 = vector.broadcast %cst_12 : f32 to vector<1x128xf32>
      %20 = arith.mulf %18, %19 : vector<1x128xf32>
      %21 = vector.broadcast %20 : vector<1x128xf32> to vector<8x128xf32>
      %22 = arith.subf %16, %21 : vector<8x128xf32>
      %23 = arith.mulf %22, %22 : vector<8x128xf32>
      %cst_13 = arith.constant dense<0.000000e+00> : vector<128xf32>
      %24 = vector.multi_reduction <add>, %23, %cst_13 [0] : vector<8x128xf32> to vector<128xf32>
      %25 = vector.shape_cast %24 : vector<128xf32> to vector<1x128xf32>
      %cst_14 = arith.constant 1.250000e-01 : f32
      %26 = vector.broadcast %cst_14 : f32 to vector<1x128xf32>
      %27 = arith.mulf %25, %26 : vector<1x128xf32>
      %c0_15 = arith.constant 0 : index
      %c0_16 = arith.constant 0 : index
      %28 = vector.load %arg5[%c0_15, %c0_16] : memref<1x128xf32, #tpu.memory_space<vmem>>, vector<1x128xf32>
      %cst_17 = arith.constant 9.99999974E-6 : f32
      %29 = vector.broadcast %cst_17 : f32 to vector<1x128xf32>
      %30 = arith.addf %27, %29 : vector<1x128xf32>
      %31 = math.rsqrt %30 : vector<1x128xf32>
      %32 = arith.mulf %28, %31 : vector<1x128xf32>
      %c0_18 = arith.constant 0 : index
      %c0_19 = arith.constant 0 : index
      %33 = vector.load %arg6[%c0_18, %c0_19] : memref<1x128xf32, #tpu.memory_space<vmem>>, vector<1x128xf32>
      %34 = arith.mulf %20, %32 : vector<1x128xf32>
      %35 = arith.subf %33, %34 : vector<1x128xf32>
      %36 = vector.broadcast %32 : vector<1x128xf32> to vector<8x128xf32>
      %37 = arith.mulf %16, %36 : vector<8x128xf32>
      %38 = vector.broadcast %35 : vector<1x128xf32> to vector<8x128xf32>
      %39 = arith.addf %37, %38 : vector<8x128xf32>
      %cst_20 = arith.constant 0.000000e+00 : f32
      %40 = vector.broadcast %cst_20 : f32 to vector<8x128xf32>
      %41 = arith.maximumf %39, %40 : vector<8x128xf32>
      %c0_21 = arith.constant 0 : index
      %c0_22 = arith.constant 0 : index
      %42 = vector.load %arg7[%c0_21, %c0_22] : memref<8x128xf32, #tpu.memory_space<vmem>>, vector<8x128xf32>
      tpu.vector_store %arg7[%c0_21, %c0_22], %41 {strides = array<i32>} : memref<8x128xf32, #tpu.memory_space<vmem>>, vector<8x128xf32>,
    } else {
    }
    return
  }
  func.func @transform_0(%arg0: i32, %arg1: i32, %arg2: i32) -> (i32, i32) {
    %c0_i32 = arith.constant 0 : i32
    return %arg2, %arg1 : i32, i32
  }
  func.func @transform_1(%arg0: i32, %arg1: i32, %arg2: i32) -> (i32, i32) {
    %c0_i32 = arith.constant 0 : i32
    return %arg0, %arg1 : i32, i32
  }
  func.func @transform_2(%arg0: i32, %arg1: i32, %arg2: i32) -> (i32, i32) {
    %c0_i32 = arith.constant 0 : i32
    %c0_i32_0 = arith.constant 0 : i32
    return %c0_i32, %arg0 : i32, i32
  }
  func.func @transform_3(%arg0: i32, %arg1: i32, %arg2: i32) -> (i32, i32) {
    %c0_i32 = arith.constant 0 : i32
    %c0_i32_0 = arith.constant 0 : i32
    return %c0_i32, %arg0 : i32, i32
  }
  func.func @transform_4(%arg0: i32, %arg1: i32, %arg2: i32) -> (i32, i32) {
    %c0_i32 = arith.constant 0 : i32
    %c0_i32_0 = arith.constant 0 : i32
    return %c0_i32, %arg0 : i32, i32
  }
}

</mosaic_0001>

<bundles_post_ra>
// kernel: tpu_custom_call.1
= control target key start
LH: loop header
LB: loop body
LE: loop exit
PB: predicated region body
PF: predicated region fallthrough
CT: control target
= control target key end

     0   :  { %vm35_vm0 = vcmask 261120   ;;  %s335_s0 = inlined_call_operand.vmem [shape: f32[8,32], index: 0, kind: input, shape index: {}]   ;;  %s336_s1 = inlined_call_operand.vmem [shape: f32[128,32], index: 1, kind: input, shape index: {}]   ;;  %s337_s2 = inlined_call_operand.vmem [shape: f32[1,128], index: 2, kind: input, shape index: {}]   ;;  %s338_s3 = inlined_call_operand.vmem [shape: f32[1,128], index: 3, kind: input, shape index: {}]   ;;  %s339_s4 = inlined_call_operand.hbm [shape: f32[8,128], index: 4, kind: output, shape index: {}]  }
   0x1   :  { %v34_v0 = vld [vmem:[%s336_s1 + $0x78] sm:$0xff]  ;;  %v33_v1 = vld [vmem:[%s336_s1 + $0x70] sm:$0xff] }
   0x2   :  { %186 = vmatpush.xpose.msk.msra.mxu0 %vm35_vm0, %v34_v0 }
   0x3   :  { %9 = vsyncpa [#allocation3], 0  ;;  %v32_v2 = vld [vmem:[%s336_s1 + $0x68] sm:$0xff]  ;;  %v31_v3 = vld [vmem:[%s336_s1 + $0x60] sm:$0xff]  ;;  %s232_s25 = smov [#allocation2]  }
   0x4   :  { %v30_v4 = vld [vmem:[%s336_s1 + $0x58] sm:$0xff]  ;;  %v29_v5 = vld [vmem:[%s336_s1 + $0x50] sm:$0xff]  ;;  %v28_v6 = vld [vmem:[%s336_s1 + $0x48] sm:$0xff]  ;;  %s175_s26 = sshll.u32 %s232_s25, 4  ;;  %s176_s26 = int_to_ptr.vmem [resolvable:$true] %s175_s26 }
   0x5   :  { %v27_v7 = vld [vmem:[%s336_s1 + $0x40] sm:$0xff]  ;;  %v26_v8 = vld [vmem:[%s336_s1 + $0x38] sm:$0xff]  ;;  %v25_v9 = vld [vmem:[%s336_s1 + $0x30] sm:$0xff] }
   0x6   :  { %187 = vmatpush.xpose.msk.msra.mxu0 %vm35_vm0, %v33_v1  ;;  %v24_v10 = vld [vmem:[%s336_s1 + $0x28] sm:$0xff]  ;;  %v23_v11 = vld [vmem:[%s336_s1 + $0x20] sm:$0xff]  ;;  %v22_v12 = vld [vmem:[%s336_s1 + $0x18] sm:$0xff] }
   0x7   :  { %v21_v13 = vld [vmem:[%s336_s1 + $0x10] sm:$0xff]  ;;  %v20_v14 = vld [vmem:[%s336_s1 + $0x8] sm:$0xff]  ;;  %v19_v15 = vld [vmem:[%s336_s1] sm:$0xff] }
   0x8   :  { %v18_v16 = vld [vmem:[%s335_s0] sm:$0xff] }
   0x9   :  { %v144_v40 = vld [vmem:[%s337_s2] sm:$0x1]  ;;  %s177_s2 = sshll.u32 %s339_s4, 4  ;;  %s178_s2 = int_to_ptr.hbm [resolvable:$true] %s177_s2 }
   0xa   :  { %188 = vmatpush.xpose.msk.msra.mxu0 %vm35_vm0, %v32_v2  ;;  %v157_v44 = vld [vmem:[%s338_s3] sm:$0x1] }
   0xe   :  { %189 = vmatpush.xpose.msk.msra.mxu0 %vm35_vm0, %v31_v3 }
  0x12   :  { %190 = vmatpush.xpose.msk.msra.mxu0 %vm35_vm0, %v30_v4 }
  0x16   :  { %191 = vmatpush.xpose.msk.msra.mxu0 %vm35_vm0, %v29_v5 }
  0x1a   :  { %192 = vmatpush.xpose.msk.msra.mxu0 %vm35_vm0, %v28_v6 }
  0x1e   :  { %193 = vmatpush.xpose.msk.msra.mxu0 %vm35_vm0, %v27_v7 }
  0x22   :  { %194 = vmatpush.xpose.msk.msra.mxu0 %vm35_vm0, %v26_v8 }
  0x26   :  { %195 = vmatpush.xpose.msk.msra.mxu0 %vm35_vm0, %v25_v9 }
  0x2a   :  { %196 = vmatpush.xpose.msk.msra.mxu0 %vm35_vm0, %v24_v10 }
  0x2e   :  { %197 = vmatpush.xpose.msk.msra.mxu0 %vm35_vm0, %v23_v11 }
  0x32   :  { %198 = vmatpush.xpose.msk.msra.mxu0 %vm35_vm0, %v22_v12 }
  0x36   :  { %199 = vmatpush.xpose.msk.msra.mxu0 %vm35_vm0, %v21_v13 }
  0x3a   :  { %200 = vmatpush.xpose.msk.msra.mxu0 %vm35_vm0, %v20_v14 }
  0x3e   :  { %201 = vmatpush.xpose.msk.msra.mxu0 %vm35_vm0, %v19_v15 }
  0x41   :  { %202 = vmatmul.msk.f32.vlgmr.msra.gmra.mxu0 %vm35_vm0, %v18_v16 }
  0xbe   :  { %v104_v17 = vpop.f32.mrf.mxu0 }
  0xbf   :  { %v128_v18 = vrot.slane %v104_v17, 4 }
  0xc1   :  { %v129_v19 = vadd.f32 %v128_v18, %v104_v17 }
  0xc3   :  { %v130_v20 = vrot.slane %v129_v19, 2 }
  0xc5   :  { %v131_v21 = vadd.f32 %v130_v20, %v129_v19 }
  0xc7   :  { %v132_v22 = vrot.slane %v131_v21, 1 }
  0xc9   :  { %v133_v23 = vadd.f32 %v132_v22, %v131_v21 }
  0xcb   :  { %v134_v24 = vmul.f32 0.125, %v133_v23 }
  0xcd   :  { %v135_v25 = vsub.f32 %v104_v17, %v134_v24 }
  0xcf   :  { %v136_v26 = vmul.f32 %v135_v25, %v135_v25 }
  0xd1   :  { %v137_v27 = vrot.slane %v136_v26, 4 }
  0xd3   :  { %v138_v28 = vadd.f32 %v137_v27, %v136_v26 }
  0xd5   :  { %v139_v29 = vrot.slane %v138_v28, 2 }
  0xd7   :  { %v140_v30 = vadd.f32 %v139_v29, %v138_v28 }
  0xd9   :  { %v141_v31 = vrot.slane %v140_v30, 1 }
  0xdb   :  { %v142_v32 = vadd.f32 %v141_v31, %v140_v30 }
  0xdd   :  { %v143_v33 = vmul.f32 0.125, %v142_v32 }
  0xdf   :  { %v145_v34 = vadd.f32 1e-05, %v143_v33 }
  0xe1   :  { %204 = vrsqrt.f32 %v145_v34  ;;  %vm152_vm2 = vweird.f32 %v145_v34 }
  0xe7   :  { %v205_v35 = vpop.eup %204 }
  0xe8   :  { %v147_v36 = vmul.f32 %v205_v35, %v145_v34  ;;  %vm153_vm1 = vweird.f32 %v205_v35 }
  0xe9   :  { %vm154_vm3 = vmor %vm152_vm2, %vm153_vm1 }
  0xea   :  { %v148_v37 = vmul.f32 %v205_v35, %v147_v36 }
  0xec   :  { %v149_v38 = vmul.f32 0.5, %v148_v37 }
  0xee   :  { %v150_v39 = vsub.f32 1.5, %v149_v38 }
  0xf0   :  { %v151_v41 = vmul.f32 %v205_v35, %v150_v39 }
  0xf2   :  { %v155_v42 = vsel %vm154_vm3, %v205_v35, %v151_v41 }
  0xf3   :  { %v156_v43 = vmul.f32 %v155_v42, %v144_v40 }
  0xf5   :  { %v158_v45 = vmul.f32 %v156_v43, %v134_v24  ;;  %v161_v46 = vperm.slane %v156_v43, 0 }
  0xf7   :  { %v159_v47 = vsub.f32 %v157_v44, %v158_v45  ;;  %v163_v48 = vmul.f32 %v161_v46, %v104_v17 }
  0xf9   :  { %v165_v49 = vperm.slane %v159_v47, 0 }
  0xfb   :  { %v167_v50 = vadd.f32 %v165_v49, %v163_v48 }
  0xfd   :  { %v168_v51 = vmax.f32 %v167_v50, 0.0 }
  0xff   :  { %169 = vst [vmem:[#allocation2] sm:$0xff] %v168_v51 }
 0x100   :  { %180 = dma.vmem_to_hbm [thread:$0]  %s176_s26, 128, %s178_s2, [#allocation3]  }
 0x101   :  { %230 = dma.done.wait [#allocation3], 128  }
 0x102   :  { %231 = vsyncadd [#allocation3], 4294967168 }
 0x103   :  { %185 = vsyncpa [#allocation3], 1 }

</bundles_post_ra>
